<compile_context>
chip_gen: v6e
topology: v6e:2x2x1
jax: 0.10.0
libtpu: 0.0.40
codegen_flags: <defaults>
</compile_context>

<pallas_src>
import functools

import jax
import jax.numpy as jnp
from jax.experimental import pallas as pl
from jax.experimental.pallas import tpu as pltpu

_LANE = 128                 # TPU lane width; F1/F2 padded to a multiple of this
_MAX_TILE = 8192            # max rows per grid step (multiple of _ROW_ALIGN)
_ROW_ALIGN = 256            # batch-tile granularity (multiple of 8 sublanes)
_SMALL_BATCH_MAX = 1024     # below this, skip the grid/pipeline machinery
_VMEM_LIMIT = 48 * 1024 * 1024


def _cdiv(a, b):
    return -(-a // b)


def _round_up(a, m):
    return _cdiv(a, m) * m


def _mlp_kernel(x_ref, w1_ref, b1_ref, w2_ref, b2_ref, o_ref):
    """Fused Linear->ReLU->Linear->ReLU on one batch tile (MXU + VPU)."""
    # Layer 1: matmul in the weights' dtype (x already cast at the call
    # boundary), f32 accumulation; bias add + ReLU in f32.
    h = jnp.dot(x_ref[...], w1_ref[...], preferred_element_type=jnp.float32)
    h = jnp.maximum(h + b1_ref[...], 0.0)
    # Layer 2 (hidden and output feature dims pre-padded to multiples of 128,
    # so both the contraction and the store are lane-dense).
    y = jnp.dot(h.astype(w2_ref.dtype), w2_ref[...],
                preferred_element_type=jnp.float32)
    y = jnp.maximum(y + b2_ref[...], 0.0)
    o_ref[...] = y.astype(o_ref.dtype)


def prepare_params(w1, b1, w2, b2, *, compute_dtype=jnp.float32):
    """One-time (init-time) parameter prep: transpose to (in, out) layout,
    2-D biases, and zero-pad BOTH the hidden dim F1 and the output dim F2 to
    multiples of 128 so every MXU output / store is lane-dense.
    Padding is numerically inert: ReLU(x @ 0 + 0) = 0 in padded hidden
    columns, and padded W2 rows/cols are zero. Returns (params, original_F2)."""
    f1, d = w1.shape
    f2 = w2.shape[0]
    f1_pad = max(_LANE, _round_up(f1, _LANE))
    f2_pad = max(_LANE, _round_up(f2, _LANE))

    w1_t = jnp.zeros((d, f1_pad), compute_dtype).at[:, :f1].set(
        w1.T.astype(compute_dtype))                              # (D, F1p)
    b1_p = jnp.zeros((1, f1_pad), jnp.float32).at[:, :f1].set(
        b1.astype(jnp.float32))                                  # (1, F1p)
    w2_t = jnp.zeros((f1_pad, f2_pad), compute_dtype).at[:f1, :f2].set(
        w2.T.astype(compute_dtype))                              # (F1p, F2p)
    b2_p = jnp.zeros((1, f2_pad), jnp.float32).at[:, :f2].set(
        b2.astype(jnp.float32))                                  # (1, F2p)
    return (w1_t, b1_p, w2_t, b2_p), f2


def _cost_estimate(b, d, f1p, f2p, in_dtype):
    in_bytes = jnp.dtype(in_dtype).itemsize
    flops = 2 * b * (d * f1p + f1p * f2p)
    bytes_accessed = (b * d * in_bytes                       # x stream
                      + (d * f1p + f1p * f2p) * in_bytes     # weights (once)
                      + b * f2p * 4)                         # padded f32 out
    return pl.CostEstimate(flops=flops, transcendentals=0,
                           bytes_accessed=bytes_accessed)


def _forward_no_grid(x, w1_t, b1_p, w2_t, b2_p):
    """Small-batch path: everything in VMEM, single kernel invocation,
    no grid / pipeline machinery."""
    b, d = x.shape
    f1p = w1_t.shape[1]
    f2p = w2_t.shape[1]
    vmem = pl.BlockSpec(memory_space=pltpu.MemorySpace.VMEM)
    return pl.pallas_call(
        _mlp_kernel,
        out_shape=jax.ShapeDtypeStruct((b, f2p), jnp.float32),
        in_specs=[vmem, vmem, vmem, vmem, vmem],
        out_specs=vmem,
        cost_estimate=_cost_estimate(b, d, f1p, f2p, x.dtype),
    )(x, w1_t, b1_p, w2_t, b2_p)


def _forward_tiled(x, w1_t, b1_p, w2_t, b2_p, *, tile):
    """Large-batch path: grid over batch rows; weights/biases stay
    VMEM-resident across iterations (constant block index); the batch axis is
    'parallel' so both v7x TensorCores are used; x is triple-buffered so the
    input DMA hides its start latency behind the (tiny) compute."""
    b, d = x.shape
    f1p = w1_t.shape[1]
    f2p = w2_t.shape[1]
    return pl.pallas_call(
        _mlp_kernel,
        out_shape=jax.ShapeDtypeStruct((b, f2p), jnp.float32),
        grid=(b // tile,),
        in_specs=[
            pl.BlockSpec((tile, d), lambda i: (i, 0),
                         pipeline_mode=pl.Buffered(3)),
            pl.BlockSpec((d, f1p), lambda i: (0, 0)),
            pl.BlockSpec((1, f1p), lambda i: (0, 0)),
            pl.BlockSpec((f1p, f2p), lambda i: (0, 0)),
            pl.BlockSpec((1, f2p), lambda i: (0, 0)),
        ],
        out_specs=pl.BlockSpec((tile, f2p), lambda i: (i, 0)),
        compiler_params=pltpu.CompilerParams(
            dimension_semantics=("parallel",),
            vmem_limit_bytes=_VMEM_LIMIT),
        cost_estimate=_cost_estimate(b, d, f1p, f2p, x.dtype),
    )(x, w1_t, b1_p, w2_t, b2_p)


@functools.partial(jax.jit, static_argnames=("f2",))
def simple_net1_forward(x, params, f2):
    """x: (B, ipVec_dim); params from prepare_params(); returns (B, f2)."""
    w1_t, b1_p, w2_t, b2_p = params
    compute_dtype = w1_t.dtype
    b = x.shape[0]
    # Boundary cast (no-op for f32): with compute_dtype=bf16 the HBM->VMEM x
    # stream is already half-width, instead of casting inside the kernel.
    x = x.astype(compute_dtype)

    if b <= _SMALL_BATCH_MAX:
        out_p = _forward_no_grid(x, w1_t, b1_p, w2_t, b2_p)
    else:
        # Smallest EVEN number of grid steps with tile <= _MAX_TILE: keeps both
        # v7x TensorCores busy and caps ragged-batch padding at n_steps*256 rows.
        n_steps = max(2, 2 * _cdiv(b, 2 * _MAX_TILE))
        tile = _round_up(_cdiv(b, n_steps), _ROW_ALIGN)
        b_pad = n_steps * tile
        if b_pad != b:
            x = jnp.pad(x, ((0, b_pad - b), (0, 0)))
        out_p = _forward_tiled(x, w1_t, b1_p, w2_t, b2_p, tile=tile)
    # TODO(synk): if the downstream consumer can take the padded (B, F2p)
    # buffer (or bf16 output), drop this slice to avoid the extra XLA pass.
    return out_p[:b, :f2]


def _ref_forward(x, w1, b1, w2, b2):
    h = jnp.maximum(x @ w1.T + b1, 0.0)
    return jnp.maximum(h @ w2.T + b2, 0.0)


if __name__ == "__main__":
    # Shapes implied by the module: x is (batch, ipVec_dim);
    # args.x_fdim1 / args.x_fdim2 are hidden / output widths.
    batch = 8
    ipVec_dim = 64
    x_fdim1 = 32
    x_fdim2 = 16

    key = jax.random.PRNGKey(0)
    kx, kw1, kb1, kw2, kb2, kxb = jax.random.split(key, 6)

    x = jax.random.normal(kx, (batch, ipVec_dim), dtype=jnp.float32)
    # Deterministic "synthetic checkpoint" init (PyTorch Linear shapes).
    w1 = jax.random.normal(kw1, (x_fdim1, ipVec_dim), dtype=jnp.float32) * 0.1
    b1 = jax.random.normal(kb1, (x_fdim1,), dtype=jnp.float32) * 0.1
    w2 = jax.random.normal(kw2, (x_fdim2, x_fdim1), dtype=jnp.float32) * 0.1
    b2 = jax.random.normal(kb2, (x_fdim2,), dtype=jnp.float32) * 0.1

    # One-time parameter prep (transpose / bias reshape / lane padding).
    # For v6e/v7x inference, pass compute_dtype=jnp.bfloat16 (and relax tol).
    params, f2 = prepare_params(w1, b1, w2, b2, compute_dtype=jnp.float32)

    # Small-batch (no-grid) path.
    out = simple_net1_forward(x, params, f2)
    jax.block_until_ready(out)
    ref = _ref_forward(x, w1, b1, w2, b2)
    assert out.shape == (batch, x_fdim2)
    assert jnp.allclose(out, ref, atol=1e-5, rtol=1e-5), "small-batch mismatch"

    # Batch-tiled (gridded) path with a ragged batch: exercises the even-step
    # tile selection and the zero-pad + slice-off handling.
    big_batch = 3000
    x_big = jax.random.normal(kxb, (big_batch, ipVec_dim), dtype=jnp.float32)
    out_big = simple_net1_forward(x_big, params, f2)
    jax.block_until_ready(out_big)
    ref_big = _ref_forward(x_big, w1, b1, w2, b2)
    assert out_big.shape == (big_batch, x_fdim2)
    assert jnp.allclose(out_big, ref_big, atol=5e-5, rtol=5e-5), "tiled mismatch"

    print("KERNEL_OK")
</pallas_src>

<mosaic_0001>
module attributes {stable_mosaic.version = 11 : i64} {
  func.func @_mlp_kernel(%arg0: memref<8x64xf32, #tpu.memory_space<vmem>>, %arg1: memref<64x128xf32, #tpu.memory_space<vmem>>, %arg2: memref<1x128xf32, #tpu.memory_space<vmem>>, %arg3: memref<128x128xf32, #tpu.memory_space<vmem>>, %arg4: memref<1x128xf32, #tpu.memory_space<vmem>>, %arg5: memref<8x128xf32, #tpu.memory_space<vmem>>) attributes {dimension_semantics = [], scalar_prefetch = 0 : i64, scratch_operands = 0 : i64, tpu.core_type = #tpu.core_type<tc>} {
    %c0 = arith.constant 0 : index
    %c0_0 = arith.constant 0 : index
    %0 = vector.load %arg0[%c0, %c0_0] : memref<8x64xf32, #tpu.memory_space<vmem>>, vector<8x64xf32>
    %c0_1 = arith.constant 0 : index
    %c0_2 = arith.constant 0 : index
    %1 = vector.load %arg1[%c0_1, %c0_2] : memref<64x128xf32, #tpu.memory_space<vmem>>, vector<64x128xf32>
    %cst = arith.constant dense<0.000000e+00> : vector<8x128xf32>
    %2 = tpu.matmul %0, %1, %cst {dimension_numbers = #tpu.dot_dimension_numbers<[1], [0], [0], [1], [0, 0, 1, 1], [], []>} : vector<8x64xf32>, vector<64x128xf32>, vector<8x128xf32> -> vector<8x128xf32>
    %c0_3 = arith.constant 0 : index
    %c0_4 = arith.constant 0 : index
    %3 = vector.load %arg2[%c0_3, %c0_4] : memref<1x128xf32, #tpu.memory_space<vmem>>, vector<1x128xf32>
    %4 = vector.broadcast %3 : vector<1x128xf32> to vector<8x128xf32>
    %5 = arith.addf %2, %4 : vector<8x128xf32>
    %cst_5 = arith.constant 0.000000e+00 : f32
    %6 = vector.broadcast %cst_5 : f32 to vector<8x128xf32>
    %7 = arith.maximumf %5, %6 : vector<8x128xf32>
    %c0_6 = arith.constant 0 : index
    %c0_7 = arith.constant 0 : index
    %8 = vector.load %arg3[%c0_6, %c0_7] : memref<128x128xf32, #tpu.memory_space<vmem>>, vector<128x128xf32>
    %cst_8 = arith.constant dense<0.000000e+00> : vector<8x128xf32>
    %9 = tpu.matmul %7, %8, %cst_8 {dimension_numbers = #tpu.dot_dimension_numbers<[1], [0], [0], [1], [0, 0, 1, 1], [], []>} : vector<8x128xf32>, vector<128x128xf32>, vector<8x128xf32> -> vector<8x128xf32>
    %c0_9 = arith.constant 0 : index
    %c0_10 = arith.constant 0 : index
    %10 = vector.load %arg4[%c0_9, %c0_10] : memref<1x128xf32, #tpu.memory_space<vmem>>, vector<1x128xf32>
    %11 = vector.broadcast %10 : vector<1x128xf32> to vector<8x128xf32>
    %12 = arith.addf %9, %11 : vector<8x128xf32>
    %cst_11 = arith.constant 0.000000e+00 : f32
    %13 = vector.broadcast %cst_11 : f32 to vector<8x128xf32>
    %14 = arith.maximumf %12, %13 : vector<8x128xf32>
    %c0_12 = arith.constant 0 : index
    %c0_13 = arith.constant 0 : index
    %15 = vector.load %arg5[%c0_12, %c0_13] : memref<8x128xf32, #tpu.memory_space<vmem>>, vector<8x128xf32>
    tpu.vector_store %arg5[%c0_12, %c0_13], %14 {strides = array<i32>} : memref<8x128xf32, #tpu.memory_space<vmem>>, vector<8x128xf32>,
    return
  }
}

</mosaic_0001>

<bundles_post_ra>
// kernel: simple_net1_forward.1
= control target key start
LH: loop header
LB: loop body
LE: loop exit
PB: predicated region body
PF: predicated region fallthrough
CT: control target
= control target key end

     0   :  { %10 = vsyncpa [#allocation3], 0  ;;  %s521_s0 = inlined_call_operand.hbm [shape: f32[8,64], index: 0, kind: input, shape index: {}]   ;;  %s522_s1 = inlined_call_operand.hbm [shape: f32[64,128], index: 1, kind: input, shape index: {}]   ;;  %s523_s2 = inlined_call_operand.vmem [shape: f32[1,128], index: 2, kind: input, shape index: {}]   ;;  %s524_s3 = inlined_call_operand.hbm [shape: f32[128,128], index: 3, kind: input, shape index: {}]   ;;  %s525_s4 = inlined_call_operand.vmem [shape: f32[1,128], index: 4, kind: input, shape index: {}]   ;;  %s526_s5 = inlined_call_operand.hbm [shape: f32[8,128], index: 5, kind: output, shape index: {}]  }
   0x1   :  { %11 = vsyncpa [#allocation6], 0 }
   0x2   :  { %12 = vsyncpa [#allocation4], 0  ;;  %s439_s18 = smov [#allocation5]  }
   0x3   :  { %s28_s19 = sshll.u32 %s439_s18, 4  ;;  %s29_s19 = int_to_ptr.vmem [resolvable:$true] %s28_s19 }
   0x4   :  { %s361_s20 = scalar_lea.vmem %s29_s19, 1024  ;;  %p366_p1 = scmp.lt.s32.totalorder %s29_s19, %s29_s19 }
   0x5   :  { %p362_p0 = scmp.ne.s32.totalorder %s29_s19, %s361_s20  ;;  %p367_p2 = scmp.lt.s32.totalorder %s361_s20, %s361_s20 }
   0x7   :  { %p368_p3 = por %p367_p2, %p366_p1 }
   0x9   :  { %p369_p4 = pnand %p368_p3, %p362_p0 }
   0xb   :  { %372 = shalt.err (!%p369_p4)
}
   0xc   :  { %s440_s21 = smov 128   ;;  %s441_s22 = smov 8  }
   0xd   :  { %34 = dma.hbm_to_vmem [thread:$0]  %s522_s1, 1024, %s29_s19, [#allocation6], %s440_s21, %s440_s21, %s441_s22  }
   0xe   :  { %s442_s25 = smov [#allocation2]   ;;  %s443_s27 = smov [#allocation7]  }
   0xf   :  { %s19_s26 = sshll.u32 %s442_s25, 4  ;;  %s42_s28 = sshll.u32 %s443_s27, 4  ;;  %s20_s26 = int_to_ptr.vmem [resolvable:$true] %s19_s26  ;;  %s43_s28 = int_to_ptr.vmem [resolvable:$true] %s42_s28 }
  0x10   :  { %s381_s29 = scalar_lea.vmem %s20_s26, 128  ;;  %p386_p6 = scmp.lt.s32.totalorder %s20_s26, %s20_s26 }
  0x11   :  { %p382_p5 = scmp.ne.s32.totalorder %s20_s26, %s381_s29  ;;  %p387_p7 = scmp.lt.s32.totalorder %s381_s29, %s381_s29 }
  0x13   :  { %p388_p8 = por %p387_p7, %p386_p6 }
  0x15   :  { %p389_p9 = pnand %p388_p8, %p382_p5 }
  0x17   :  { %392 = shalt.err (!%p389_p9)
}
  0x18   :  { %22 = dma.hbm_to_vmem [thread:$0]  %s521_s0, 128, %s20_s26, [#allocation3]  }
  0x19   :  { %s401_s7 = scalar_lea.vmem %s43_s28, 2048  ;;  %p406_p11 = scmp.lt.s32.totalorder %s43_s28, %s43_s28 }
  0x1a   :  { %p402_p10 = scmp.ne.s32.totalorder %s43_s28, %s401_s7  ;;  %p407_p12 = scmp.lt.s32.totalorder %s401_s7, %s401_s7 }
  0x1c   :  { %p408_p13 = por %p407_p12, %p406_p11 }
  0x1e   :  { %p409_p0 = pnand %p408_p13, %p402_p10 }
  0x20   :  { %412 = shalt.err (!%p409_p0)
}
  0x21   :  { %48 = dma.hbm_to_vmem [thread:$0]  %s524_s3, 2048, %s43_s28, [#allocation6], %s440_s21, %s440_s21, %s441_s22  }
  0x22   :  { %433 = dma.done.wait [#allocation3], 128  }
  0x23   :  { %434 = vsyncadd [#allocation3], 4294967168 }
  0x24   :  { %435 = dma.done.wait [#allocation6], 3072  }
  0x25   :  { %436 = vsyncadd [#allocation6], 4294964224  ;;  %v444_v0 = vmov 0.0   ;;  %vm445_vm0 = vmmov 0   ;;  %v68_v1 = vld [vmem:[#allocation5 + $0x38] sm:$0xff]  ;;  %v67_v2 = vld [vmem:[#allocation5 + $0x30] sm:$0xff] }
  0x26   :  { %291 = vmatprep.subr.mxu0 %v444_v0  ;;  %307 = vmatprep.mubr.msk.f32.mxu0 %vm445_vm0, %v444_v0  ;;  %v66_v3 = vld [vmem:[#allocation5 + $0x28] sm:$0xff]  ;;  %v166_v4 = vld [vmem:[#allocation7 + $0x78] sm:$0xff]  ;;  %v165_v5 = vld [vmem:[#allocation7 + $0x70] sm:$0xff]  ;;  %vm76_vm1 = vcmask 523264   ;;  %s446_s11 = smov [#allocation8]  }
  0x27   :  { %310 = vmatprep.subr.mxu1 %v444_v0  ;;  %342 = vmatprep.mubr.msk.f32.mxu1 %vm445_vm0, %v444_v0  ;;  %v65_v6 = vld [vmem:[#allocation5 + $0x20] sm:$0xff]  ;;  %v164_v7 = vld [vmem:[#allocation7 + $0x68] sm:$0xff]  ;;  %v64_v8 = vld [vmem:[#allocation5 + $0x18] sm:$0xff]  ;;  %s252_s12 = sshll.u32 %s446_s11, 4  ;;  %s253_s12 = int_to_ptr.vmem [resolvable:$true] %s252_s12 }
  0x28   :  { %292 = vmatpush3.msra.mxu0 %v68_v1  ;;  %311 = vmatpush3.msra.mxu1 %v166_v4  ;;  %v163_v9 = vld [vmem:[#allocation7 + $0x60] sm:$0xff]  ;;  %v63_v10 = vld [vmem:[#allocation5 + $0x10] sm:$0xff]  ;;  %v162_v11 = vld [vmem:[#allocation7 + $0x58] sm:$0xff]  ;;  %s413_s13 = scalar_lea.vmem %s253_s12, 128  ;;  %p418_p2 = scmp.lt.s32.totalorder %s253_s12, %s253_s12 }
  0x29   :  { %293 = vmatprep.subr.mxu0 %v444_v0  ;;  %312 = vmatprep.subr.mxu1 %v444_v0  ;;  %v62_v12 = vld [vmem:[#allocation5 + $0x8] sm:$0xff]  ;;  %v161_v13 = vld [vmem:[#allocation7 + $0x50] sm:$0xff]  ;;  %v61_v14 = vld [vmem:[#allocation5] sm:$0xff]  ;;  %p414_p1 = scmp.ne.s32.totalorder %s253_s12, %s413_s13  ;;  %p419_p3 = scmp.lt.s32.totalorder %s413_s13, %s413_s13 }
  0x2a   :  { %294 = vmatpush3.msra.mxu0 %v67_v2  ;;  %313 = vmatpush3.msra.mxu1 %v165_v5  ;;  %v60_v15 = vld [vmem:[#allocation2] sm:$0xff]  ;;  %v160_v16 = vld [vmem:[#allocation7 + $0x48] sm:$0xff]  ;;  %v159_v17 = vld [vmem:[#allocation7 + $0x40] sm:$0xff] }
  0x2b   :  { %295 = vmatprep.subr.mxu0 %v444_v0  ;;  %314 = vmatprep.subr.mxu1 %v444_v0  ;;  %v158_v18 = vld [vmem:[#allocation7 + $0x38] sm:$0xff]  ;;  %v157_v19 = vld [vmem:[#allocation7 + $0x30] sm:$0xff]  ;;  %v156_v20 = vld [vmem:[#allocation7 + $0x28] sm:$0xff]  ;;  %p420_p4 = por %p419_p3, %p418_p2 }
  0x2c   :  { %296 = vmatpush3.msra.mxu0 %v66_v3  ;;  %315 = vmatpush3.msra.mxu1 %v164_v7  ;;  %v155_v21 = vld [vmem:[#allocation7 + $0x20] sm:$0xff]  ;;  %v154_v22 = vld [vmem:[#allocation7 + $0x18] sm:$0xff]  ;;  %v153_v23 = vld [vmem:[#allocation7 + $0x10] sm:$0xff] }
  0x2d   :  { %297 = vmatprep.subr.mxu0 %v444_v0  ;;  %316 = vmatprep.subr.mxu1 %v444_v0  ;;  %v152_v24 = vld [vmem:[#allocation7 + $0x8] sm:$0xff]  ;;  %v151_v25 = vld [vmem:[#allocation7] sm:$0xff]  ;;  %v262_v26 = vld [vmem:[%s523_s2] ss:$0 sm:$0xff]  ;;  %p421_p5 = pnand %p420_p4, %p414_p1 }
  0x2e   :  { %298 = vmatpush3.msra.mxu0 %v65_v6  ;;  %317 = vmatpush3.msra.mxu1 %v163_v9  ;;  %v264_v31 = vld [vmem:[%s525_s4] ss:$0 sm:$0xff] }
  0x2f   :  { %299 = vmatprep.subr.mxu0 %v444_v0  ;;  %318 = vmatprep.subr.mxu1 %v444_v0 }
  0x30   :  { %300 = vmatpush3.msra.mxu0 %v64_v8  ;;  %319 = vmatpush3.msra.mxu1 %v162_v11 }
  0x31   :  { %301 = vmatprep.subr.mxu0 %v444_v0  ;;  %320 = vmatprep.subr.mxu1 %v444_v0 }
  0x32   :  { %302 = vmatpush3.msra.mxu0 %v63_v10  ;;  %321 = vmatpush3.msra.mxu1 %v161_v13 }
  0x33   :  { %303 = vmatprep.subr.mxu0 %v444_v0  ;;  %322 = vmatprep.subr.mxu1 %v444_v0 }
  0x34   :  { %304 = vmatpush3.msra.mxu0 %v62_v12  ;;  %323 = vmatpush3.msra.mxu1 %v160_v16 }
  0x35   :  { %305 = vmatprep.subr.mxu0 %v444_v0  ;;  %324 = vmatprep.subr.mxu1 %v444_v0 }
  0x36   :  { %306 = vmatpush3.msra.mxu0 %v61_v14  ;;  %325 = vmatpush3.msra.mxu1 %v159_v17 }
  0x37   :  { %308 = vmatmul.mubr.msk.f32.vlgmr.msra.gmra.mxu0 %vm76_vm1, %v60_v15  ;;  %326 = vmatprep.subr.mxu1 %v444_v0 }
  0x38   :  { %327 = vmatpush3.msra.mxu1 %v158_v18 }
  0x39   :  { %328 = vmatprep.subr.mxu1 %v444_v0 }
  0x3a   :  { %329 = vmatpush3.msra.mxu1 %v157_v19 }
  0x3b   :  { %330 = vmatprep.subr.mxu1 %v444_v0 }
  0x3c   :  { %331 = vmatpush3.msra.mxu1 %v156_v20 }
  0x3d   :  { %332 = vmatprep.subr.mxu1 %v444_v0 }
  0x3e   :  { %333 = vmatpush3.msra.mxu1 %v155_v21 }
  0x3f   :  { %334 = vmatprep.subr.mxu1 %v444_v0 }
  0x40   :  { %335 = vmatpush3.msra.mxu1 %v154_v22 }
  0x41   :  { %336 = vmatprep.subr.mxu1 %v444_v0 }
  0x42   :  { %337 = vmatpush3.msra.mxu1 %v153_v23 }
  0x43   :  { %338 = vmatprep.subr.mxu1 %v444_v0 }
  0x44   :  { %339 = vmatpush3.msra.mxu1 %v152_v24 }
  0x45   :  { %340 = vmatprep.subr.mxu1 %v444_v0 }
  0x46   :  { %341 = vmatpush3.msra.mxu1 %v151_v25 }
  0xf7   :  { %v146_v27 = vpop.f32.mrf.mxu0 }
  0xf8   :  { %v147_v28 = vadd.f32 %v262_v26, %v146_v27 }
  0xf9   :  { %v309_v29 = vpop.f32.mrf.mxu0 }
  0xfa   :  { %v150_v30 = vmax.f32 %v147_v28, 0.0 }
  0xfc   :  { %343 = vmatmul.mubr.f32.vlgmr.msra.gmra.mxu1 %v150_v30 }
 0x1bc   :  { %v240_v32 = vpop.f32.mrf.mxu1 }
 0x1bd   :  { %v241_v33 = vadd.f32 %v264_v31, %v240_v32 }
 0x1be   :  { %v344_v34 = vpop.f32.mrf.mxu1 }
 0x1bf   :  { %v244_v35 = vmax.f32 %v241_v33, 0.0 }
 0x1c1   :  { %245 = vst [vmem:[#allocation8] sm:$0xff] %v244_v35 }
 0x1c2   :  { %424 = shalt.err (!%p421_p5)
}
 0x1c3   :  { %255 = dma.vmem_to_hbm [thread:$0]  %s253_s12, 128, %s526_s5, [#allocation4]  }
 0x1c4   :  { %437 = dma.done.wait [#allocation4], 128  }
 0x1c5   :  { %438 = vsyncadd [#allocation4], 4294967168 }
 0x1c6   :  { %259 = vsyncpa [#allocation3], 1 }
 0x1c7   :  { %260 = vsyncpa [#allocation6], 1 }
 0x1c8   :  { %261 = vsyncpa [#allocation4], 1 }

</bundles_post_ra>
